<compile_context>
chip_gen: v7x
topology: tpu7x:2x2x1
jax: 0.10.0
libtpu: 0.0.40
codegen_flags: <defaults>
</compile_context>

<pallas_src>
import functools

import jax
import jax.numpy as jnp
from jax.experimental import pallas as pl
from jax.experimental.pallas import tpu as pltpu


# ----------------------------------------------------------------------------
# Kernel
# ----------------------------------------------------------------------------
def _mobiconv_kernel(p_ref, w_ref, b_ref, o_ref, *, level_co, r0, r1,
                     n_pruned, nb, hw):
    """Fused forward of all pyramid levels for one batch chunk.

    p_ref : (L*CKK, nb*HW)  bf16  stacked, pre-upsampled im2col patches
    w_ref : (OC,    L*CKK)  bf16  block-diagonal conv weights (all levels)
    b_ref : (OC, 1)         f32   per-channel biases (all levels)
    o_ref : (nb, OC, HW)    f32   gated outputs (channel-concat of all levels)
    """
    oc = sum(level_co)
    inv = 1.0 / (r0 + r1)

    # One MXU matmul for every level and every batch element in this chunk.
    conv = jnp.dot(w_ref[...], p_ref[...],
                   preferred_element_type=jnp.float32)        # (OC, nb*HW) f32
    conv = conv + b_ref[...]                                  # bias broadcast

    # Row-index helper for per-level channel masks (TPU needs >= 2-D iota).
    ridx = jax.lax.broadcasted_iota(jnp.int32, (oc, 1), 0)

    for b in range(nb):                                       # nb is 1 or 2
        hb = conv[:, b * hw:(b + 1) * hw]                     # tile-aligned lane slice
        table = None                                          # level-0 gate == 1
        gate = None                                           # per-row gate accumulator
        off = 0
        for co in level_co:
            rmask = ((ridx >= off) & (ridx < off + co)).astype(jnp.float32)  # (OC,1)
            # Gate the full slab by the previous level's table; only this
            # level's rows are consumed below, so no sublane slicing needed.
            h = hb if table is None else hb * table           # (OC, HW)
            # threshold = (r0*mean + r1*max) / (r0+r1), per channel (lane reductions)
            mean = jnp.mean(h, axis=1, keepdims=True)         # (OC, 1)
            mx = jnp.max(h, axis=1, keepdims=True)            # (OC, 1)
            thr = (r0 * mean + r1 * mx) * inv
            ge = (h >= thr).astype(jnp.float32)               # (OC, HW)
            # new table: per-pixel count of THIS level's channels >= threshold
            new_table = jnp.sum(ge * rmask, axis=0, keepdims=True) + n_pruned  # (1, HW)
            # record the gate that applies to this level's output rows
            g = rmask if table is None else rmask * table
            gate = g if gate is None else gate + g
            table = new_table
            off += co
        # Single unmasked, lane/sublane-dense (OC, HW) store per batch element.
        o_ref[b] = hb * gate


# ----------------------------------------------------------------------------
# XLA-side data layout helpers (pure layout plumbing, no extra compute hoisted)
# ----------------------------------------------------------------------------
def _max_pool(x, size):
    if size == 1:
        return x
    n, c, h, w = x.shape
    return x.reshape(n, c, h // size, size, w // size, size).max(axis=(3, 5))


def _im2col(x, k=3, pad=1):
    """(N, C, Hp, Wp) -> (N, C*K*K, Hp, Wp); feature order (c, ki, kj) matches
    Conv2d.weight.reshape(co, C*K*K)."""
    n, c, h, w = x.shape
    xp = jnp.pad(x, ((0, 0), (0, 0), (pad, pad), (pad, pad)))
    cols = [xp[:, :, di:di + h, dj:dj + w] for di in range(k) for dj in range(k)]
    pat = jnp.stack(cols, axis=2)                      # (N, C, K*K, Hp, Wp)
    return pat.reshape(n, c * k * k, h, w)


def _upsample_nearest(x, size):
    if size == 1:
        return x
    n, f, hp, wp = x.shape
    x = jnp.broadcast_to(x[:, :, :, None, :, None], (n, f, hp, size, wp, size))
    return x.reshape(n, f, hp * size, wp * size)


def _num_batch_chunks(n, hw):
    """One grid step per TensorCore: 2 chunks on v7x (2 TCs/chip), else 1."""
    try:
        kind = jax.devices()[0].device_kind.lower()
    except Exception:
        kind = ""
    if ("v7" in kind or "tpu7" in kind) and n % 2 == 0 and ((n // 2) * hw) % 128 == 0:
        return 2
    return 1


# ----------------------------------------------------------------------------
# Wrapper
# ----------------------------------------------------------------------------
def mobiconv_block(x, params, *, n_pools, n_pruned, ratio, n_chunks=None):
    """x: (N, C, H, W) float32 (NCHW). params: list of (weight (co,C,3,3), bias (co,)).
    Returns (N, out_channels, H, W) float32."""
    n, c, h, w = x.shape
    hw = h * w
    ckk = c * 9
    nlev = len(params)
    if n_chunks is None:
        n_chunks = _num_batch_chunks(n, hw)
    nb = n // n_chunks

    size = 2 ** n_pools
    level_co, patch_blocks, w_rows, b_rows = [], [], [], []
    for li, (wgt, bias) in enumerate(params):
        co = wgt.shape[0]
        pooled = _max_pool(x, size)                           # (N, C, H/s, W/s)
        cols = _upsample_nearest(_im2col(pooled), size)       # (N, CKK, H, W)
        patch_blocks.append(cols.reshape(n, ckk, hw))
        # Block-diagonal weight rows: level li only sees its own CKK patch rows.
        wrow = jnp.zeros((co, nlev * ckk), jnp.float32)
        wrow = wrow.at[:, li * ckk:(li + 1) * ckk].set(wgt.reshape(co, ckk))
        w_rows.append(wrow)
        b_rows.append(bias.reshape(co, 1))
        level_co.append(co)
        size //= 2
    oc = sum(level_co)

    # Fold batch into the lane axis: (L*CKK, N*HW), batch-major columns.
    p_all = jnp.concatenate(patch_blocks, axis=1)             # (N, L*CKK, HW)
    p_all = jnp.transpose(p_all, (1, 0, 2)).reshape(nlev * ckk, n * hw)
    p_all = p_all.astype(jnp.bfloat16)
    w_bd = jnp.concatenate(w_rows, axis=0).astype(jnp.bfloat16)   # (OC, L*CKK)
    b_all = jnp.concatenate(b_rows, axis=0).astype(jnp.float32)   # (OC, 1)

    kern = functools.partial(
        _mobiconv_kernel, level_co=tuple(level_co),
        r0=float(ratio[0]), r1=float(ratio[1]),
        n_pruned=float(n_pruned), nb=nb, hw=hw)

    out = pl.pallas_call(
        kern,
        grid=(n_chunks,),
        in_specs=[
            pl.BlockSpec((nlev * ckk, nb * hw), lambda i: (0, i)),   # patches (per chunk)
            pl.BlockSpec((oc, nlev * ckk), lambda i: (0, 0)),        # weights (invariant)
            pl.BlockSpec((oc, 1), lambda i: (0, 0)),                 # biases  (invariant)
        ],
        out_specs=pl.BlockSpec((nb, oc, hw), lambda i: (i, 0, 0)),
        out_shape=jax.ShapeDtypeStruct((n, oc, hw), jnp.float32),
        compiler_params=pltpu.CompilerParams(
            dimension_semantics=("parallel",)),
    )(p_all, w_bd, b_all)

    return out.reshape(n, oc, h, w)


# ----------------------------------------------------------------------------
# Pure-JAX reference (same bf16 conv inputs) for a soft correctness check
# ----------------------------------------------------------------------------
def _reference(x, params, *, n_pools, n_pruned, ratio):
    n, c, h, w = x.shape
    size = 2 ** n_pools
    table = jnp.ones((n, 1, h, w), jnp.float32)
    outs = []
    for (wgt, b) in params:
        co = wgt.shape[0]
        pooled = _max_pool(x, size)
        cols = _im2col(pooled).astype(jnp.bfloat16)            # (N, CKK, Hp, Wp)
        wm = wgt.reshape(co, -1).astype(jnp.bfloat16)
        conv = jnp.einsum('ok,nkab->noab', wm, cols,
                          preferred_element_type=jnp.float32)
        conv = conv + b.reshape(1, co, 1, 1)
        hh = _upsample_nearest(conv, size) * table
        mean = jnp.mean(hh, axis=(-2, -1), keepdims=True)
        mx = jnp.max(hh, axis=(-2, -1), keepdims=True)
        thr = (ratio[0] * mean + ratio[1] * mx) / (ratio[0] + ratio[1])
        table = jnp.sum((hh >= thr).astype(jnp.float32), axis=1,
                        keepdims=True) + n_pruned
        outs.append(hh)
        size //= 2
    return jnp.concatenate(outs, axis=1)


if __name__ == "__main__":
    # Small shapes consistent with the module's constraints.
    N, C, H, W = 2, 4, 16, 16
    n_pools, n_layers, out_channels = 3, 4, 16
    n_pruned, ratio = 0, (1, 1)
    assert out_channels >= n_pools * n_layers

    key = jax.random.PRNGKey(0)
    kx, key = jax.random.split(key)
    x = jax.random.normal(kx, (N, C, H, W), jnp.float32)

    # n_pools convs of n_layers channels plus the remainder conv, each
    # Conv2d(C, co, 3, padding=1, stride=1, bias=True).
    channel_splits = [n_layers] * n_pools + [out_channels - n_pools * n_layers]
    params = []
    for co in channel_splits:
        kw, kb, key = jax.random.split(key, 3)
        wgt = jax.random.normal(kw, (co, C, 3, 3), jnp.float32) * 0.1
        b = jax.random.normal(kb, (co,), jnp.float32) * 0.1
        params.append((wgt, b))

    fwd = jax.jit(functools.partial(mobiconv_block, n_pools=n_pools,
                                    n_pruned=n_pruned, ratio=ratio))
    out = jax.block_until_ready(fwd(x, params))
    assert out.shape == (N, out_channels, H, W), out.shape
    assert bool(jnp.all(jnp.isfinite(out)))

    # Soft check vs. pure-JAX reference (fraction-based: the hard >= threshold
    # in the gating table can legitimately flip isolated borderline pixels).
    ref = _reference(x, params, n_pools=n_pools, n_pruned=n_pruned, ratio=ratio)
    ok = jnp.mean((jnp.abs(out - ref) <= 1e-3 + 1e-3 * jnp.abs(ref))
                  .astype(jnp.float32))
    assert float(ok) > 0.98, f"match fraction too low: {float(ok)}"

    print("KERNEL_OK")
</pallas_src>

<mosaic_0001>
module attributes {stable_mosaic.version = 11 : i64} {
  func.func @_mobiconv_kernel(%arg0: i32, %arg1: memref<144x512xbf16, #tpu.memory_space<vmem>>, %arg2: memref<16x144xbf16, #tpu.memory_space<vmem>>, %arg3: memref<16x1xf32, #tpu.memory_space<vmem>>, %arg4: memref<2x16x256xf32, #tpu.memory_space<vmem>>) attributes {dimension_semantics = [#tpu.dimension_semantics<parallel>], iteration_bounds = array<i64: 1>, scalar_prefetch = 0 : i64, scratch_operands = 0 : i64, tpu.core_type = #tpu.core_type<tc>, window_params = [{transform_indices = @transform_0, window_bounds = array<i64: 144, 512>}, {pipeline_mode = #tpu.pipeline_mode<synchronous>, transform_indices = @transform_1, window_bounds = array<i64: 16, 144>}, {pipeline_mode = #tpu.pipeline_mode<synchronous>, transform_indices = @transform_2, window_bounds = array<i64: 16, 1>}, {transform_indices = @transform_3, window_bounds = array<i64: 2, 16, 256>}]} {
    %c0 = arith.constant 0 : index
    %c0_0 = arith.constant 0 : index
    %0 = vector.load %arg2[%c0, %c0_0] : memref<16x144xbf16, #tpu.memory_space<vmem>>, vector<16x144xbf16>
    %c0_1 = arith.constant 0 : index
    %c0_2 = arith.constant 0 : index
    %1 = vector.load %arg1[%c0_1, %c0_2] : memref<144x512xbf16, #tpu.memory_space<vmem>>, vector<144x512xbf16>
    %cst = arith.constant dense<0.000000e+00> : vector<16x512xf32>
    %2 = tpu.matmul %0, %1, %cst {dimension_numbers = #tpu.dot_dimension_numbers<[1], [0], [0], [1], [0, 0, 1, 1], [], []>} : vector<16x144xbf16>, vector<144x512xbf16>, vector<16x512xf32> -> vector<16x512xf32>
    %c0_3 = arith.constant 0 : index
    %c0_4 = arith.constant 0 : index
    %3 = vector.load %arg3[%c0_3, %c0_4] : memref<16x1xf32, #tpu.memory_space<vmem>>, vector<16x1xf32>
    %4 = vector.broadcast %3 : vector<16x1xf32> to vector<16x512xf32>
    %5 = arith.addf %2, %4 : vector<16x512xf32>
    %6 = tpu.iota {dimensions = array<i32: 0>} : vector<16x1xi32>
    %7 = vector.extract_strided_slice %5 {offsets = [0, 0], sizes = [16, 256], strides = [1, 1]} : vector<16x512xf32> to vector<16x256xf32>
    %c0_i32 = arith.constant 0 : i32
    %8 = vector.broadcast %c0_i32 : i32 to vector<16x1xi32>
    %9 = arith.cmpi sge, %6, %8 : vector<16x1xi32>
    %c4_i32 = arith.constant 4 : i32
    %10 = vector.broadcast %c4_i32 : i32 to vector<16x1xi32>
    %11 = arith.cmpi slt, %6, %10 : vector<16x1xi32>
    %12 = arith.andi %9, %11 : vector<16x1xi1>
    %13 = arith.extui %12 : vector<16x1xi1> to vector<16x1xi32>
    %14 = arith.sitofp %13 : vector<16x1xi32> to vector<16x1xf32>
    %cst_5 = arith.constant dense<0.000000e+00> : vector<16xf32>
    %15 = vector.multi_reduction <add>, %7, %cst_5 [1] : vector<16x256xf32> to vector<16xf32>
    %16 = vector.shape_cast %15 : vector<16xf32> to vector<16x1xf32>
    %cst_6 = arith.constant 2.560000e+02 : f32
    %17 = vector.broadcast %cst_6 : f32 to vector<16x1xf32>
    %18 = arith.divf %16, %17 : vector<16x1xf32>
    %cst_7 = arith.constant dense<0xFF800000> : vector<16xf32>
    %19 = vector.multi_reduction <maximumf>, %7, %cst_7 [1] : vector<16x256xf32> to vector<16xf32>
    %20 = vector.shape_cast %19 : vector<16xf32> to vector<16x1xf32>
    %cst_8 = arith.constant 1.000000e+00 : f32
    %21 = vector.broadcast %cst_8 : f32 to vector<16x1xf32>
    %22 = arith.mulf %21, %18 : vector<16x1xf32>
    %cst_9 = arith.constant 1.000000e+00 : f32
    %23 = vector.broadcast %cst_9 : f32 to vector<16x1xf32>
    %24 = arith.mulf %23, %20 : vector<16x1xf32>
    %25 = arith.addf %22, %24 : vector<16x1xf32>
    %cst_10 = arith.constant 5.000000e-01 : f32
    %26 = vector.broadcast %cst_10 : f32 to vector<16x1xf32>
    %27 = arith.mulf %25, %26 : vector<16x1xf32>
    %28 = vector.broadcast %27 : vector<16x1xf32> to vector<16x256xf32>
    %29 = arith.cmpf oge, %7, %28 : vector<16x256xf32>
    %30 = arith.extui %29 : vector<16x256xi1> to vector<16x256xi32>
    %31 = arith.sitofp %30 : vector<16x256xi32> to vector<16x256xf32>
    %32 = vector.broadcast %14 : vector<16x1xf32> to vector<16x256xf32>
    %33 = arith.mulf %31, %32 : vector<16x256xf32>
    %cst_11 = arith.constant dense<0.000000e+00> : vector<256xf32>
    %34 = vector.multi_reduction <add>, %33, %cst_11 [0] : vector<16x256xf32> to vector<256xf32>
    %35 = vector.shape_cast %34 : vector<256xf32> to vector<1x256xf32>
    %cst_12 = arith.constant 0.000000e+00 : f32
    %36 = vector.broadcast %cst_12 : f32 to vector<1x256xf32>
    %37 = arith.addf %35, %36 : vector<1x256xf32>
    %c4_i32_13 = arith.constant 4 : i32
    %38 = vector.broadcast %c4_i32_13 : i32 to vector<16x1xi32>
    %39 = arith.cmpi sge, %6, %38 : vector<16x1xi32>
    %c8_i32 = arith.constant 8 : i32
    %40 = vector.broadcast %c8_i32 : i32 to vector<16x1xi32>
    %41 = arith.cmpi slt, %6, %40 : vector<16x1xi32>
    %42 = arith.andi %39, %41 : vector<16x1xi1>
    %43 = arith.extui %42 : vector<16x1xi1> to vector<16x1xi32>
    %44 = arith.sitofp %43 : vector<16x1xi32> to vector<16x1xf32>
    %45 = vector.broadcast %37 : vector<1x256xf32> to vector<16x256xf32>
    %46 = arith.mulf %7, %45 : vector<16x256xf32>
    %cst_14 = arith.constant dense<0.000000e+00> : vector<16xf32>
    %47 = vector.multi_reduction <add>, %46, %cst_14 [1] : vector<16x256xf32> to vector<16xf32>
    %48 = vector.shape_cast %47 : vector<16xf32> to vector<16x1xf32>
    %cst_15 = arith.constant 2.560000e+02 : f32
    %49 = vector.broadcast %cst_15 : f32 to vector<16x1xf32>
    %50 = arith.divf %48, %49 : vector<16x1xf32>
    %cst_16 = arith.constant dense<0xFF800000> : vector<16xf32>
    %51 = vector.multi_reduction <maximumf>, %46, %cst_16 [1] : vector<16x256xf32> to vector<16xf32>
    %52 = vector.shape_cast %51 : vector<16xf32> to vector<16x1xf32>
    %cst_17 = arith.constant 1.000000e+00 : f32
    %53 = vector.broadcast %cst_17 : f32 to vector<16x1xf32>
    %54 = arith.mulf %53, %50 : vector<16x1xf32>
    %cst_18 = arith.constant 1.000000e+00 : f32
    %55 = vector.broadcast %cst_18 : f32 to vector<16x1xf32>
    %56 = arith.mulf %55, %52 : vector<16x1xf32>
    %57 = arith.addf %54, %56 : vector<16x1xf32>
    %cst_19 = arith.constant 5.000000e-01 : f32
    %58 = vector.broadcast %cst_19 : f32 to vector<16x1xf32>
    %59 = arith.mulf %57, %58 : vector<16x1xf32>
    %60 = vector.broadcast %59 : vector<16x1xf32> to vector<16x256xf32>
    %61 = arith.cmpf oge, %46, %60 : vector<16x256xf32>
    %62 = arith.extui %61 : vector<16x256xi1> to vector<16x256xi32>
    %63 = arith.sitofp %62 : vector<16x256xi32> to vector<16x256xf32>
    %64 = vector.broadcast %44 : vector<16x1xf32> to vector<16x256xf32>
    %65 = arith.mulf %63, %64 : vector<16x256xf32>
    %cst_20 = arith.constant dense<0.000000e+00> : vector<256xf32>
    %66 = vector.multi_reduction <add>, %65, %cst_20 [0] : vector<16x256xf32> to vector<256xf32>
    %67 = vector.shape_cast %66 : vector<256xf32> to vector<1x256xf32>
    %cst_21 = arith.constant 0.000000e+00 : f32
    %68 = vector.broadcast %cst_21 : f32 to vector<1x256xf32>
    %69 = arith.addf %67, %68 : vector<1x256xf32>
    %70 = vector.broadcast %44 : vector<16x1xf32> to vector<16x256xf32>
    %71 = vector.broadcast %37 : vector<1x256xf32> to vector<16x256xf32>
    %72 = arith.mulf %70, %71 : vector<16x256xf32>
    %73 = vector.broadcast %14 : vector<16x1xf32> to vector<16x256xf32>
    %74 = arith.addf %73, %72 : vector<16x256xf32>
    %c8_i32_22 = arith.constant 8 : i32
    %75 = vector.broadcast %c8_i32_22 : i32 to vector<16x1xi32>
    %76 = arith.cmpi sge, %6, %75 : vector<16x1xi32>
    %c12_i32 = arith.constant 12 : i32
    %77 = vector.broadcast %c12_i32 : i32 to vector<16x1xi32>
    %78 = arith.cmpi slt, %6, %77 : vector<16x1xi32>
    %79 = arith.andi %76, %78 : vector<16x1xi1>
    %80 = arith.extui %79 : vector<16x1xi1> to vector<16x1xi32>
    %81 = arith.sitofp %80 : vector<16x1xi32> to vector<16x1xf32>
    %82 = vector.broadcast %69 : vector<1x256xf32> to vector<16x256xf32>
    %83 = arith.mulf %7, %82 : vector<16x256xf32>
    %cst_23 = arith.constant dense<0.000000e+00> : vector<16xf32>
    %84 = vector.multi_reduction <add>, %83, %cst_23 [1] : vector<16x256xf32> to vector<16xf32>
    %85 = vector.shape_cast %84 : vector<16xf32> to vector<16x1xf32>
    %cst_24 = arith.constant 2.560000e+02 : f32
    %86 = vector.broadcast %cst_24 : f32 to vector<16x1xf32>
    %87 = arith.divf %85, %86 : vector<16x1xf32>
    %cst_25 = arith.constant dense<0xFF800000> : vector<16xf32>
    %88 = vector.multi_reduction <maximumf>, %83, %cst_25 [1] : vector<16x256xf32> to vector<16xf32>
    %89 = vector.shape_cast %88 : vector<16xf32> to vector<16x1xf32>
    %cst_26 = arith.constant 1.000000e+00 : f32
    %90 = vector.broadcast %cst_26 : f32 to vector<16x1xf32>
    %91 = arith.mulf %90, %87 : vector<16x1xf32>
    %cst_27 = arith.constant 1.000000e+00 : f32
    %92 = vector.broadcast %cst_27 : f32 to vector<16x1xf32>
    %93 = arith.mulf %92, %89 : vector<16x1xf32>
    %94 = arith.addf %91, %93 : vector<16x1xf32>
    %cst_28 = arith.constant 5.000000e-01 : f32
    %95 = vector.broadcast %cst_28 : f32 to vector<16x1xf32>
    %96 = arith.mulf %94, %95 : vector<16x1xf32>
    %97 = vector.broadcast %96 : vector<16x1xf32> to vector<16x256xf32>
    %98 = arith.cmpf oge, %83, %97 : vector<16x256xf32>
    %99 = arith.extui %98 : vector<16x256xi1> to vector<16x256xi32>
    %100 = arith.sitofp %99 : vector<16x256xi32> to vector<16x256xf32>
    %101 = vector.broadcast %81 : vector<16x1xf32> to vector<16x256xf32>
    %102 = arith.mulf %100, %101 : vector<16x256xf32>
    %cst_29 = arith.constant dense<0.000000e+00> : vector<256xf32>
    %103 = vector.multi_reduction <add>, %102, %cst_29 [0] : vector<16x256xf32> to vector<256xf32>
    %104 = vector.shape_cast %103 : vector<256xf32> to vector<1x256xf32>
    %cst_30 = arith.constant 0.000000e+00 : f32
    %105 = vector.broadcast %cst_30 : f32 to vector<1x256xf32>
    %106 = arith.addf %104, %105 : vector<1x256xf32>
    %107 = vector.broadcast %81 : vector<16x1xf32> to vector<16x256xf32>
    %108 = vector.broadcast %69 : vector<1x256xf32> to vector<16x256xf32>
    %109 = arith.mulf %107, %108 : vector<16x256xf32>
    %110 = arith.addf %74, %109 : vector<16x256xf32>
    %c12_i32_31 = arith.constant 12 : i32
    %111 = vector.broadcast %c12_i32_31 : i32 to vector<16x1xi32>
    %112 = arith.cmpi sge, %6, %111 : vector<16x1xi32>
    %c16_i32 = arith.constant 16 : i32
    %113 = vector.broadcast %c16_i32 : i32 to vector<16x1xi32>
    %114 = arith.cmpi slt, %6, %113 : vector<16x1xi32>
    %115 = arith.andi %112, %114 : vector<16x1xi1>
    %116 = arith.extui %115 : vector<16x1xi1> to vector<16x1xi32>
    %117 = arith.sitofp %116 : vector<16x1xi32> to vector<16x1xf32>
    %118 = vector.broadcast %117 : vector<16x1xf32> to vector<16x256xf32>
    %119 = vector.broadcast %106 : vector<1x256xf32> to vector<16x256xf32>
    %120 = arith.mulf %118, %119 : vector<16x256xf32>
    %121 = arith.addf %110, %120 : vector<16x256xf32>
    %122 = arith.mulf %7, %121 : vector<16x256xf32>
    %c0_32 = arith.constant 0 : index
    %c0_33 = arith.constant 0 : index
    %c0_34 = arith.constant 0 : index
    %123 = vector.load %arg4[%c0_32, %c0_33, %c0_34] : memref<2x16x256xf32, #tpu.memory_space<vmem>>, vector<1x16x256xf32>
    %124 = vector.shape_cast %123 : vector<1x16x256xf32> to vector<16x256xf32>
    %125 = vector.shape_cast %122 : vector<16x256xf32> to vector<1x16x256xf32>
    tpu.vector_store %arg4[%c0_32, %c0_33, %c0_34], %125 {strides = array<i32>} : memref<2x16x256xf32, #tpu.memory_space<vmem>>, vector<1x16x256xf32>,
    %126 = vector.extract_strided_slice %5 {offsets = [0, 256], sizes = [16, 256], strides = [1, 1]} : vector<16x512xf32> to vector<16x256xf32>
    %c0_i32_35 = arith.constant 0 : i32
    %127 = vector.broadcast %c0_i32_35 : i32 to vector<16x1xi32>
    %128 = arith.cmpi sge, %6, %127 : vector<16x1xi32>
    %c4_i32_36 = arith.constant 4 : i32
    %129 = vector.broadcast %c4_i32_36 : i32 to vector<16x1xi32>
    %130 = arith.cmpi slt, %6, %129 : vector<16x1xi32>
    %131 = arith.andi %128, %130 : vector<16x1xi1>
    %132 = arith.extui %131 : vector<16x1xi1> to vector<16x1xi32>
    %133 = arith.sitofp %132 : vector<16x1xi32> to vector<16x1xf32>
    %cst_37 = arith.constant dense<0.000000e+00> : vector<16xf32>
    %134 = vector.multi_reduction <add>, %126, %cst_37 [1] : vector<16x256xf32> to vector<16xf32>
    %135 = vector.shape_cast %134 : vector<16xf32> to vector<16x1xf32>
    %cst_38 = arith.constant 2.560000e+02 : f32
    %136 = vector.broadcast %cst_38 : f32 to vector<16x1xf32>
    %137 = arith.divf %135, %136 : vector<16x1xf32>
    %cst_39 = arith.constant dense<0xFF800000> : vector<16xf32>
    %138 = vector.multi_reduction <maximumf>, %126, %cst_39 [1] : vector<16x256xf32> to vector<16xf32>
    %139 = vector.shape_cast %138 : vector<16xf32> to vector<16x1xf32>
    %cst_40 = arith.constant 1.000000e+00 : f32
    %140 = vector.broadcast %cst_40 : f32 to vector<16x1xf32>
    %141 = arith.mulf %140, %137 : vector<16x1xf32>
    %cst_41 = arith.constant 1.000000e+00 : f32
    %142 = vector.broadcast %cst_41 : f32 to vector<16x1xf32>
    %143 = arith.mulf %142, %139 : vector<16x1xf32>
    %144 = arith.addf %141, %143 : vector<16x1xf32>
    %cst_42 = arith.constant 5.000000e-01 : f32
    %145 = vector.broadcast %cst_42 : f32 to vector<16x1xf32>
    %146 = arith.mulf %144, %145 : vector<16x1xf32>
    %147 = vector.broadcast %146 : vector<16x1xf32> to vector<16x256xf32>
    %148 = arith.cmpf oge, %126, %147 : vector<16x256xf32>
    %149 = arith.extui %148 : vector<16x256xi1> to vector<16x256xi32>
    %150 = arith.sitofp %149 : vector<16x256xi32> to vector<16x256xf32>
    %151 = vector.broadcast %133 : vector<16x1xf32> to vector<16x256xf32>
    %152 = arith.mulf %150, %151 : vector<16x256xf32>
    %cst_43 = arith.constant dense<0.000000e+00> : vector<256xf32>
    %153 = vector.multi_reduction <add>, %152, %cst_43 [0] : vector<16x256xf32> to vector<256xf32>
    %154 = vector.shape_cast %153 : vector<256xf32> to vector<1x256xf32>
    %cst_44 = arith.constant 0.000000e+00 : f32
    %155 = vector.broadcast %cst_44 : f32 to vector<1x256xf32>
    %156 = arith.addf %154, %155 : vector<1x256xf32>
    %c4_i32_45 = arith.constant 4 : i32
    %157 = vector.broadcast %c4_i32_45 : i32 to vector<16x1xi32>
    %158 = arith.cmpi sge, %6, %157 : vector<16x1xi32>
    %c8_i32_46 = arith.constant 8 : i32
    %159 = vector.broadcast %c8_i32_46 : i32 to vector<16x1xi32>
    %160 = arith.cmpi slt, %6, %159 : vector<16x1xi32>
    %161 = arith.andi %158, %160 : vector<16x1xi1>
    %162 = arith.extui %161 : vector<16x1xi1> to vector<16x1xi32>
    %163 = arith.sitofp %162 : vector<16x1xi32> to vector<16x1xf32>
    %164 = vector.broadcast %156 : vector<1x256xf32> to vector<16x256xf32>
    %165 = arith.mulf %126, %164 : vector<16x256xf32>
    %cst_47 = arith.constant dense<0.000000e+00> : vector<16xf32>
    %166 = vector.multi_reduction <add>, %165, %cst_47 [1] : vector<16x256xf32> to vector<16xf32>
    %167 = vector.shape_cast %166 : vector<16xf32> to vector<16x1xf32>
    %cst_48 = arith.constant 2.560000e+02 : f32
    %168 = vector.broadcast %cst_48 : f32 to vector<16x1xf32>
    %169 = arith.divf %167, %168 : vector<16x1xf32>
    %cst_49 = arith.constant dense<0xFF800000> : vector<16xf32>
    %170 = vector.multi_reduction <maximumf>, %165, %cst_49 [1] : vector<16x256xf32> to vector<16xf32>
    %171 = vector.shape_cast %170 : vector<16xf32> to vector<16x1xf32>
    %cst_50 = arith.constant 1.000000e+00 : f32
    %172 = vector.broadcast %cst_50 : f32 to vector<16x1xf32>
    %173 = arith.mulf %172, %169 : vector<16x1xf32>
    %cst_51 = arith.constant 1.000000e+00 : f32
    %174 = vector.broadcast %cst_51 : f32 to vector<16x1xf32>
    %175 = arith.mulf %174, %171 : vector<16x1xf32>
    %176 = arith.addf %173, %175 : vector<16x1xf32>
    %cst_52 = arith.constant 5.000000e-01 : f32
    %177 = vector.broadcast %cst_52 : f32 to vector<16x1xf32>
    %178 = arith.mulf %176, %177 : vector<16x1xf32>
    %179 = vector.broadcast %178 : vector<16x1xf32> to vector<16x256xf32>
    %180 = arith.cmpf oge, %165, %179 : vector<16x256xf32>
    %181 = arith.extui %180 : vector<16x256xi1> to vector<16x256xi32>
    %182 = arith.sitofp %181 : vector<16x256xi32> to vector<16x256xf32>
    %183 = vector.broadcast %163 : vector<16x1xf32> to vector<16x256xf32>
    %184 = arith.mulf %182, %183 : vector<16x256xf32>
    %cst_53 = arith.constant dense<0.000000e+00> : vector<256xf32>
    %185 = vector.multi_reduction <add>, %184, %cst_53 [0] : vector<16x256xf32> to vector<256xf32>
    %186 = vector.shape_cast %185 : vector<256xf32> to vector<1x256xf32>
    %cst_54 = arith.constant 0.000000e+00 : f32
    %187 = vector.broadcast %cst_54 : f32 to vector<1x256xf32>
    %188 = arith.addf %186, %187 : vector<1x256xf32>
    %189 = vector.broadcast %163 : vector<16x1xf32> to vector<16x256xf32>
    %190 = vector.broadcast %156 : vector<1x256xf32> to vector<16x256xf32>
    %191 = arith.mulf %189, %190 : vector<16x256xf32>
    %192 = vector.broadcast %133 : vector<16x1xf32> to vector<16x256xf32>
    %193 = arith.addf %192, %191 : vector<16x256xf32>
    %c8_i32_55 = arith.constant 8 : i32
    %194 = vector.broadcast %c8_i32_55 : i32 to vector<16x1xi32>
    %195 = arith.cmpi sge, %6, %194 : vector<16x1xi32>
    %c12_i32_56 = arith.constant 12 : i32
    %196 = vector.broadcast %c12_i32_56 : i32 to vector<16x1xi32>
    %197 = arith.cmpi slt, %6, %196 : vector<16x1xi32>
    %198 = arith.andi %195, %197 : vector<16x1xi1>
    %199 = arith.extui %198 : vector<16x1xi1> to vector<16x1xi32>
    %200 = arith.sitofp %199 : vector<16x1xi32> to vector<16x1xf32>
    %201 = vector.broadcast %188 : vector<1x256xf32> to vector<16x256xf32>
    %202 = arith.mulf %126, %201 : vector<16x256xf32>
    %cst_57 = arith.constant dense<0.000000e+00> : vector<16xf32>
    %203 = vector.multi_reduction <add>, %202, %cst_57 [1] : vector<16x256xf32> to vector<16xf32>
    %204 = vector.shape_cast %203 : vector<16xf32> to vector<16x1xf32>
    %cst_58 = arith.constant 2.560000e+02 : f32
    %205 = vector.broadcast %cst_58 : f32 to vector<16x1xf32>
    %206 = arith.divf %204, %205 : vector<16x1xf32>
    %cst_59 = arith.constant dense<0xFF800000> : vector<16xf32>
    %207 = vector.multi_reduction <maximumf>, %202, %cst_59 [1] : vector<16x256xf32> to vector<16xf32>
    %208 = vector.shape_cast %207 : vector<16xf32> to vector<16x1xf32>
    %cst_60 = arith.constant 1.000000e+00 : f32
    %209 = vector.broadcast %cst_60 : f32 to vector<16x1xf32>
    %210 = arith.mulf %209, %206 : vector<16x1xf32>
    %cst_61 = arith.constant 1.000000e+00 : f32
    %211 = vector.broadcast %cst_61 : f32 to vector<16x1xf32>
    %212 = arith.mulf %211, %208 : vector<16x1xf32>
    %213 = arith.addf %210, %212 : vector<16x1xf32>
    %cst_62 = arith.constant 5.000000e-01 : f32
    %214 = vector.broadcast %cst_62 : f32 to vector<16x1xf32>
    %215 = arith.mulf %213, %214 : vector<16x1xf32>
    %216 = vector.broadcast %215 : vector<16x1xf32> to vector<16x256xf32>
    %217 = arith.cmpf oge, %202, %216 : vector<16x256xf32>
    %218 = arith.extui %217 : vector<16x256xi1> to vector<16x256xi32>
    %219 = arith.sitofp %218 : vector<16x256xi32> to vector<16x256xf32>
    %220 = vector.broadcast %200 : vector<16x1xf32> to vector<16x256xf32>
    %221 = arith.mulf %219, %220 : vector<16x256xf32>
    %cst_63 = arith.constant dense<0.000000e+00> : vector<256xf32>
    %222 = vector.multi_reduction <add>, %221, %cst_63 [0] : vector<16x256xf32> to vector<256xf32>
    %223 = vector.shape_cast %222 : vector<256xf32> to vector<1x256xf32>
    %cst_64 = arith.constant 0.000000e+00 : f32
    %224 = vector.broadcast %cst_64 : f32 to vector<1x256xf32>
    %225 = arith.addf %223, %224 : vector<1x256xf32>
    %226 = vector.broadcast %200 : vector<16x1xf32> to vector<16x256xf32>
    %227 = vector.broadcast %188 : vector<1x256xf32> to vector<16x256xf32>
    %228 = arith.mulf %226, %227 : vector<16x256xf32>
    %229 = arith.addf %193, %228 : vector<16x256xf32>
    %c12_i32_65 = arith.constant 12 : i32
    %230 = vector.broadcast %c12_i32_65 : i32 to vector<16x1xi32>
    %231 = arith.cmpi sge, %6, %230 : vector<16x1xi32>
    %c16_i32_66 = arith.constant 16 : i32
    %232 = vector.broadcast %c16_i32_66 : i32 to vector<16x1xi32>
    %233 = arith.cmpi slt, %6, %232 : vector<16x1xi32>
    %234 = arith.andi %231, %233 : vector<16x1xi1>
    %235 = arith.extui %234 : vector<16x1xi1> to vector<16x1xi32>
    %236 = arith.sitofp %235 : vector<16x1xi32> to vector<16x1xf32>
    %237 = vector.broadcast %236 : vector<16x1xf32> to vector<16x256xf32>
    %238 = vector.broadcast %225 : vector<1x256xf32> to vector<16x256xf32>
    %239 = arith.mulf %237, %238 : vector<16x256xf32>
    %240 = arith.addf %229, %239 : vector<16x256xf32>
    %241 = arith.mulf %126, %240 : vector<16x256xf32>
    %c1 = arith.constant 1 : index
    %c0_67 = arith.constant 0 : index
    %c0_68 = arith.constant 0 : index
    %242 = vector.load %arg4[%c1, %c0_67, %c0_68] : memref<2x16x256xf32, #tpu.memory_space<vmem>>, vector<1x16x256xf32>
    %243 = vector.shape_cast %242 : vector<1x16x256xf32> to vector<16x256xf32>
    %244 = vector.shape_cast %241 : vector<16x256xf32> to vector<1x16x256xf32>
    tpu.vector_store %arg4[%c1, %c0_67, %c0_68], %244 {strides = array<i32>} : memref<2x16x256xf32, #tpu.memory_space<vmem>>, vector<1x16x256xf32>,
    return
  }
  func.func @transform_0(%arg0: i32) -> (i32, i32) {
    %c0_i32 = arith.constant 0 : i32
    %c0_i32_0 = arith.constant 0 : i32
    return %c0_i32, %arg0 : i32, i32
  }
  func.func @transform_1(%arg0: i32) -> (i32, i32) {
    %c0_i32 = arith.constant 0 : i32
    %c0_i32_0 = arith.constant 0 : i32
    %c0_i32_1 = arith.constant 0 : i32
    return %c0_i32, %c0_i32_0 : i32, i32
  }
  func.func @transform_2(%arg0: i32) -> (i32, i32) {
    %c0_i32 = arith.constant 0 : i32
    %c0_i32_0 = arith.constant 0 : i32
    %c0_i32_1 = arith.constant 0 : i32
    return %c0_i32, %c0_i32_0 : i32, i32
  }
  func.func @transform_3(%arg0: i32) -> (i32, i32, i32) {
    %c0_i32 = arith.constant 0 : i32
    %c0_i32_0 = arith.constant 0 : i32
    %c0_i32_1 = arith.constant 0 : i32
    return %arg0, %c0_i32, %c0_i32_0 : i32, i32, i32
  }
}

</mosaic_0001>

<bundles_post_ra>
// kernel: mobiconv_block.1
= control target key start
LH: loop header
LB: loop body
LE: loop exit
PB: predicated region body
PF: predicated region fallthrough
CT: control target
= control target key end

     0   :  { %v905_v1 = vmov 0   ;;  %vm254_vm0 = vcmask 130048   ;;  %s1302_s0 = inlined_call_operand.vmem [shape: bf16[144,512], index: 0, kind: input, shape index: {}]   ;;  %s1303_s1 = inlined_call_operand.vmem [shape: bf16[16,144], index: 1, kind: input, shape index: {}]   ;;  %s1304_s2 = inlined_call_operand.vmem [shape: f32[16,1], index: 2, kind: input, shape index: {}]   ;;  %s1305_s3 = inlined_call_operand.vmem [shape: f32[2,16,256], index: 3, kind: output, shape index: {}]  }
   0x1   :  { %v848_v0 = vld [vmem:[%s1302_s0 + $0x4] ss:$16 sps:$4 sm:$0xff]   ;;  %847 = vset.pattern.permute.xlu0 %v905_v1  ;;  %v850_v2 = vld [vmem:[%s1302_s0 + $0xc] ss:$16 sps:$4 sm:$0xff]   ;;  %v852_v3 = vld [vmem:[%s1302_s0] ss:$16 sps:$4 sm:$0xff]  }
   0x2   :  { %258 = vmatprep.subr.bf16.mxu0 %v848_v0  ;;  %v853_v4 = vld [vmem:[%s1302_s0 + $0x8] ss:$16 sps:$4 sm:$0xff]   ;;  %301 = vmatprep.subr.bf16.mxu1 %v850_v2  ;;  %v854_v5 = vld [vmem:[%s1302_s0 + $0x24] ss:$16 sps:$4 sm:$0xff]   ;;  %v856_v6 = vld [vmem:[%s1302_s0 + $0x2c] ss:$16 sps:$4 sm:$0xff]  }
   0x3   :  { %259 = vmatpush1.bf16.msra.mxu0 %v852_v3  ;;  %302 = vmatpush1.bf16.msra.mxu1 %v853_v4  ;;  %v858_v7 = vld [vmem:[%s1302_s0 + $0x20] ss:$16 sps:$4 sm:$0xff]   ;;  %v859_v8 = vld [vmem:[%s1302_s0 + $0x28] ss:$16 sps:$4 sm:$0xff]   ;;  %v860_v9 = vld [vmem:[%s1302_s0 + $0x44] ss:$16 sps:$4 sm:$0xff]  }
   0x4   :  { %260 = vmatprep.subr.bf16.mxu0 %v854_v5  ;;  %303 = vmatprep.subr.bf16.mxu1 %v856_v6  ;;  %v862_v10 = vld [vmem:[%s1302_s0 + $0x4c] ss:$16 sps:$4 sm:$0xff]   ;;  %v864_v11 = vld [vmem:[%s1302_s0 + $0x40] ss:$16 sps:$4 sm:$0xff]   ;;  %v865_v12 = vld [vmem:[%s1302_s0 + $0x48] ss:$16 sps:$4 sm:$0xff]  }
   0x5   :  { %v866_v13 = vld [vmem:[%s1302_s0 + $0x64] ss:$16 sps:$4 sm:$0xff]   ;;  %v868_v14 = vld [vmem:[%s1302_s0 + $0x6c] ss:$16 sps:$4 sm:$0xff]   ;;  %v870_v15 = vld [vmem:[%s1302_s0 + $0x60] ss:$16 sps:$4 sm:$0xff]  }
   0x6   :  { %v871_v16 = vld [vmem:[%s1302_s0 + $0x68] ss:$16 sps:$4 sm:$0xff]   ;;  %v872_v17 = vld [vmem:[%s1302_s0 + $0x84] ss:$16 sps:$4 sm:$0xff]   ;;  %v874_v18 = vld [vmem:[%s1302_s0 + $0x8c] ss:$16 sps:$4 sm:$0xff]  }
   0x7   :  { %261 = vmatpush1.bf16.msra.mxu0 %v858_v7  ;;  %304 = vmatpush1.bf16.msra.mxu1 %v859_v8  ;;  %v876_v19 = vld [vmem:[%s1302_s0 + $0x80] ss:$16 sps:$4 sm:$0xff]   ;;  %v877_v20 = vld [vmem:[%s1302_s0 + $0x88] ss:$16 sps:$4 sm:$0xff]   ;;  %v878_v21 = vld [vmem:[%s1302_s0 + $0xa4] ss:$16 sps:$4 sm:$0xff]   ;;  %v344_v8 = vlaneseq }
   0x8   :  { %262 = vmatprep.subr.bf16.mxu0 %v860_v9  ;;  %305 = vmatprep.subr.bf16.mxu1 %v862_v10  ;;  %v880_v22 = vld [vmem:[%s1302_s0 + $0xac] ss:$16 sps:$4 sm:$0xff]   ;;  %v882_v23 = vld [vmem:[%s1302_s0 + $0xa0] ss:$16 sps:$4 sm:$0xff]   ;;  %v883_v24 = vld [vmem:[%s1302_s0 + $0xa8] ss:$16 sps:$4 sm:$0xff]  }
   0x9   :  { %v884_v25 = vld [vmem:[%s1302_s0 + $0xc4] ss:$16 sps:$4 sm:$0xff]   ;;  %v886_v26 = vld [vmem:[%s1302_s0 + $0xcc] ss:$16 sps:$4 sm:$0xff]   ;;  %v888_v27 = vld [vmem:[%s1302_s0 + $0xc0] ss:$16 sps:$4 sm:$0xff]  }
   0xa   :  { %v889_v28 = vld [vmem:[%s1302_s0 + $0xc8] ss:$16 sps:$4 sm:$0xff]   ;;  %v890_v29 = vld [vmem:[%s1302_s0 + $0xe4] ss:$16 sps:$4 sm:$0xff]   ;;  %v892_v30 = vld [vmem:[%s1302_s0 + $0xec] ss:$16 sps:$4 sm:$0xff]  }
   0xb   :  { %263 = vmatpush1.bf16.msra.mxu0 %v864_v11  ;;  %306 = vmatpush1.bf16.msra.mxu1 %v865_v12  ;;  %v904_v31 = vld [vmem:[%s1303_s1 + $0x4] ss:$8 sps:$4 sm:$0xff]   ;;  %v894_v34 = vld [vmem:[%s1302_s0 + $0xe0] ss:$16 sps:$4 sm:$0xff]   ;;  %v895_v35 = vld [vmem:[%s1302_s0 + $0xe8] ss:$16 sps:$4 sm:$0xff]  }
   0xc   :  { %264 = vmatprep.subr.bf16.mxu0 %v866_v13  ;;  %307 = vmatprep.subr.bf16.mxu1 %v868_v14  ;;  %v53_v32 = vld [vmem:[%s1304_s2] sm:$0xff]  ;;  %v54_v33 = vld [vmem:[%s1304_s2 + $0x8] sm:$0xff]  ;;  %v1079_v12 = vshrl.u32 %v344_v8, 7 }
   0xd   :  { %57 = vperm.xlu0 %847, %v53_v32   ;;  %811 = vmatprep.mubr.msk.bf16.mxu0 %vm254_vm0, %v904_v31  ;;  %v896_v36 = vld [vmem:[%s1302_s0 + $0x104] ss:$16 sps:$4 sm:$0xff]   ;;  %v898_v37 = vld [vmem:[%s1302_s0 + $0x10c] ss:$16 sps:$4 sm:$0xff]   ;;  %v900_v38 = vld [vmem:[%s1302_s0 + $0x100] ss:$16 sps:$4 sm:$0xff]  }
   0xe   :  { %812 = vmatprep.mubr.msk.bf16.mxu1 %vm254_vm0, %v904_v31  ;;  %v901_v39 = vld [vmem:[%s1302_s0 + $0x108] ss:$16 sps:$4 sm:$0xff]   ;;  %vm349_vm1 = vcmp.lt.s32.totalorder %v1079_v12, 4  ;;  %vm408_vm10 = vcmp.ge.s32.totalorder %v1079_v12, 4 }
   0xf   :  { %265 = vmatpush1.bf16.msra.mxu0 %v870_v15  ;;  %308 = vmatpush1.bf16.msra.mxu1 %v871_v16  ;;  %v902_v40 = vld [vmem:[%s1303_s1] ss:$8 sps:$4 sm:$0xff]  }
  0x10   :  { %266 = vmatprep.subr.bf16.mxu0 %v872_v17  ;;  %309 = vmatprep.subr.bf16.mxu1 %v874_v18 }
  0x11   :  { %62 = vperm.xlu0 %847, %v54_v33  }
  0x13   :  { %267 = vmatpush1.bf16.msra.mxu0 %v876_v19  ;;  %310 = vmatpush1.bf16.msra.mxu1 %v877_v20  ;;  %v906_v20 = vmov 0.0  }
  0x14   :  { %268 = vmatprep.subr.bf16.mxu0 %v878_v21  ;;  %311 = vmatprep.subr.bf16.mxu1 %v880_v22  ;;  %v1085_v21 = vsel %vm349_vm1, 1.0, %v906_v20 }
  0x17   :  { %269 = vmatpush1.bf16.msra.mxu0 %v882_v23  ;;  %312 = vmatpush1.bf16.msra.mxu1 %v883_v24 }
  0x18   :  { %270 = vmatprep.subr.bf16.mxu0 %v884_v25  ;;  %313 = vmatprep.subr.bf16.mxu1 %v886_v26 }
  0x1b   :  { %271 = vmatpush1.bf16.msra.mxu0 %v888_v27  ;;  %314 = vmatpush1.bf16.msra.mxu1 %v889_v28 }
  0x1c   :  { %272 = vmatprep.subr.bf16.mxu0 %v890_v29  ;;  %315 = vmatprep.subr.bf16.mxu1 %v892_v30 }
  0x1f   :  { %273 = vmatpush1.bf16.msra.mxu0 %v894_v34  ;;  %316 = vmatpush1.bf16.msra.mxu1 %v895_v35 }
  0x20   :  { %274 = vmatprep.subr.bf16.mxu0 %v896_v36  ;;  %317 = vmatprep.subr.bf16.mxu1 %v898_v37 }
  0x23   :  { %275 = vmatpush1.bf16.msra.mxu0 %v900_v38  ;;  %318 = vmatpush1.bf16.msra.mxu1 %v901_v39 }
  0x26   :  { %291 = vmatmul.mubr.bf16.vlgmr.msra.gmra.mrb[0].mxu0 %v902_v40  ;;  %334 = vmatmul.mubr.bf16.vlgmr.msra.gmra.mrb[0].mxu1 %v902_v40 }
  0x8c   :  { %v58_v41 = vpop.permute.xlu0 %57 }
  0x90   :  { %v63_v57 = vpop.permute.xlu0 %62 }
  0xf9   :  { %v292_v42 = vpop.f32.mrb[0].mxu0  ;;  %v335_v43 = vpop.f32.mrb[0].mxu1 }
  0xfa   :  { %v1047_v44 = vadd.f32 %v292_v42, %v58_v41  ;;  %v1049_v45 = vadd.f32 %v335_v43, %v58_v41  ;;  %v294_v46 = vpop.f32.mrb[1].mxu0  ;;  %v337_v47 = vpop.f32.mrb[1].mxu1 }
  0xfb   :  { %v1051_v48 = vadd.f32 %v294_v46, %v58_v41  ;;  %v1053_v49 = vadd.f32 %v337_v47, %v58_v41  ;;  %v296_v50 = vpop.f32.mrb[2].mxu0  ;;  %v339_v51 = vpop.f32.mrb[2].mxu1 }
  0xfc   :  { %v298_v52 = vpop.f32.mrb[3].mxu0  ;;  %v341_v53 = vpop.f32.mrb[3].mxu1  ;;  %v1061_v58 = vadd.f32 %v296_v50, %v63_v57  ;;  %v1067_v61 = vadd.f32 %v339_v51, %v63_v57 }
  0xfd   :  { %v578_v54 = vadd.f32 %v1053_v49, %v1049_v45  ;;  %v357_v55 = vadd.f32 %v1051_v48, %v1047_v44  ;;  %v366_v56 = vmax.f32 %v1047_v44, %v1051_v48  ;;  %v1063_v59 = vadd.f32 %v298_v52, %v63_v57 }
  0xfe   :  { %v586_v60 = vmax.f32 %v1049_v45, %v1053_v49  ;;  %v1069_v62 = vadd.f32 %v341_v53, %v63_v57 }
  0xff   :  { %579 = vadd.xlane.f32.xlu0 %v578_v54  ;;  %358 = vadd.xlane.f32.xlu1 %v357_v55  ;;  %v360_v63 = vadd.f32 %v1063_v59, %v1061_v58  ;;  %v369_v1 = vmax.f32 %v1061_v58, %v1063_v59 }
 0x100   :  { %v581_v0 = vadd.f32 %v1069_v62, %v1067_v61  ;;  %v589_v2 = vmax.f32 %v1067_v61, %v1069_v62 }
 0x103   :  { %367 = vmax.xlane.f32.xlu1 %v366_v56 }
 0x107   :  { %587 = vmax.xlane.f32.xlu1 %v586_v60 }
 0x10b   :  { %361 = vadd.xlane.f32.xlu1 %v360_v63 }
 0x10f   :  { %582 = vadd.xlane.f32.xlu1 %v581_v0 }
 0x113   :  { %370 = vmax.xlane.f32.xlu1 %v369_v1 }
 0x117   :  { %590 = vmax.xlane.f32.xlu1 %v589_v2 }
 0x18c   :  { %v359_v3 = vpop.xlane.xlu1 %358  ;;  %v580_v7 = vpop.xlane.xlu0 %579 }
 0x18d   :  { %v364_v6 = vmul.f32 0.00390625, %v359_v3  ;;  %v584_v11 = vmul.f32 0.00390625, %v580_v7  ;;  %v1107_v7 = vsel %vm408_vm10, 1.0, %v906_v20 }
 0x190   :  { %v368_v4 = vpop.xlane.xlu1 %367 }
 0x191   :  { %v372_v9 = vadd.f32 %v368_v4, %v364_v6 }
 0x193   :  { %v374_v13 = vmul.f32 0.5, %v372_v9 }
 0x194   :  { %v588_v5 = vpop.xlane.xlu1 %587 }
 0x195   :  { %v592_v14 = vadd.f32 %v588_v5, %v584_v11  ;;  %vm376_vm2 = vcmp.ge.f32.partialorder %v1047_v44, %v374_v13  ;;  %vm377_vm3 = vcmp.ge.f32.partialorder %v1051_v48, %v374_v13 }
 0x196   :  { %v814_v22 = vsel %vm376_vm2, 1.0, %v906_v20  ;;  %v815_v23 = vsel %vm377_vm3, 1.0, %v906_v20 }
 0x197   :  { %v594_v16 = vmul.f32 0.5, %v592_v14  ;;  %v388_v27 = vmul.f32 %v814_v22, %v1085_v21  ;;  %v389_v29 = vmul.f32 %v815_v23, %v1085_v21 }
 0x198   :  { %v362_v10 = vpop.xlane.xlu1 %361 }
 0x199   :  { %v365_v17 = vmul.f32 0.00390625, %v362_v10  ;;  %vm596_vm4 = vcmp.ge.f32.partialorder %v1049_v45, %v594_v16  ;;  %vm597_vm5 = vcmp.ge.f32.partialorder %v1053_v49, %v594_v16 }
 0x19a   :  { %v829_v30 = vsel %vm596_vm4, 1.0, %v906_v20  ;;  %v830_v33 = vsel %vm597_vm5, 1.0, %v906_v20 }
 0x19b   :  { %v608_v39 = vmul.f32 %v829_v30, %v1085_v21  ;;  %v609_v40 = vmul.f32 %v830_v33, %v1085_v21 }
 0x19c   :  { %v583_v15 = vpop.xlane.xlu1 %582 }
 0x19d   :  { %v585_v24 = vmul.f32 0.00390625, %v583_v15 }
 0x1a0   :  { %v371_v18 = vpop.xlane.xlu1 %370 }
 0x1a1   :  { %v373_v19 = vadd.f32 %v371_v18, %v365_v17 }
 0x1a3   :  { %v375_v25 = vmul.f32 0.5, %v373_v19 }
 0x1a4   :  { %v591_v26 = vpop.xlane.xlu1 %590 }
 0x1a5   :  { %vm378_vm6 = vcmp.ge.f32.partialorder %v1061_v58, %v375_v25  ;;  %vm379_vm7 = vcmp.ge.f32.partialorder %v1063_v59, %v375_v25  ;;  %v593_v28 = vadd.f32 %v591_v26, %v585_v24 }
 0x1a6   :  { %v816_v31 = vsel %vm378_vm6, 1.0, %v906_v20  ;;  %v817_v32 = vsel %vm379_vm7, 1.0, %v906_v20 }
 0x1a7   :  { %v390_v34 = vmul.f32 0.0, %v816_v31  ;;  %v391_v35 = vmul.f32 0.0, %v817_v32  ;;  %v595_v36 = vmul.f32 0.5, %v593_v28 }
 0x1a9   :  { %v392_v37 = vadd.f32 %v390_v34, %v388_v27  ;;  %v399_v38 = vadd.f32 %v391_v35, %v389_v29  ;;  %vm598_vm8 = vcmp.ge.f32.partialorder %v1067_v61, %v595_v36  ;;  %vm599_vm9 = vcmp.ge.f32.partialorder %v1069_v62, %v595_v36 }
 0x1aa   :  { %v831_v41 = vsel %vm598_vm8, 1.0, %v906_v20  ;;  %v832_v42 = vsel %vm599_vm9, 1.0, %v906_v20 }
 0x1ab   :  { %v393_v43 = vrot.slane %v392_v37, 4  ;;  %v400_v46 = vrot.slane %v399_v38, 4  ;;  %v610_v47 = vmul.f32 0.0, %v831_v41  ;;  %v611_v50 = vmul.f32 0.0, %v832_v42 }
 0x1ad   :  { %v394_v51 = vadd.f32 %v393_v43, %v392_v37  ;;  %v401_v52 = vadd.f32 %v400_v46, %v399_v38  ;;  %v612_v53 = vadd.f32 %v610_v47, %v608_v39  ;;  %v619_v54 = vadd.f32 %v611_v50, %v609_v40 }
 0x1af   :  { %v395_v55 = vrot.slane %v394_v51, 2  ;;  %v402_v56 = vrot.slane %v401_v52, 2  ;;  %v613_v57 = vrot.slane %v612_v53, 4  ;;  %v620_v60 = vrot.slane %v619_v54, 4 }
 0x1b1   :  { %v396_v63 = vadd.f32 %v395_v55, %v394_v51  ;;  %v403_v0 = vadd.f32 %v402_v56, %v401_v52  ;;  %v614_v1 = vadd.f32 %v613_v57, %v612_v53  ;;  %v621_v2 = vadd.f32 %v620_v60, %v619_v54 }
 0x1b3   :  { %v397_v3 = vrot.slane %v396_v63, 1  ;;  %v404_v4 = vrot.slane %v403_v0, 1  ;;  %v615_v5 = vrot.slane %v614_v1, 2  ;;  %v622_v6 = vrot.slane %v621_v2, 2 }
 0x1b5   :  { %v1109_v8 = vadd.f32 %v397_v3, %v396_v63  ;;  %v1111_v9 = vadd.f32 %v404_v4, %v403_v0  ;;  %v616_v10 = vadd.f32 %v615_v5, %v614_v1  ;;  %v623_v11 = vadd.f32 %v622_v6, %v621_v2 }
 0x1b7   :  { %v617_v13 = vrot.slane %v616_v10, 1  ;;  %v624_v14 = vrot.slane %v623_v11, 1  ;;  %v472_v15 = vmul.f32 %v1107_v7, %v1109_v8  ;;  %v473_v16 = vmul.f32 %v1107_v7, %v1111_v9 }
 0x1b8   :  { %v418_v17 = vmul.f32 %v1109_v8, %v1047_v44  ;;  %v419_v18 = vmul.f32 %v1111_v9, %v1051_v48  ;;  %v420_v23 = vmul.f32 %v1109_v8, %v1061_v58  ;;  %v421_v24 = vmul.f32 %v1111_v9, %v1063_v59 }
 0x1b9   :  { %v1121_v19 = vadd.f32 %v617_v13, %v616_v10  ;;  %v1123_v22 = vadd.f32 %v624_v14, %v623_v11  ;;  %v1138_v30 = vadd.f32 %v1085_v21, %v472_v15  ;;  %v1141_v31 = vadd.f32 %v1085_v21, %v473_v16 }
 0x1ba   :  { %v422_v25 = vadd.f32 %v419_v18, %v418_v17  ;;  %v425_v32 = vadd.f32 %v421_v24, %v420_v23  ;;  %v433_v38 = vmax.f32 %v420_v23, %v421_v24  ;;  %v430_v41 = vmax.f32 %v418_v17, %v419_v18 }
 0x1bb   :  { %v682_v26 = vmul.f32 %v1107_v7, %v1121_v19  ;;  %v683_v27 = vmul.f32 %v1107_v7, %v1123_v22  ;;  %v630_v28 = vmul.f32 %v1121_v19, %v1067_v61  ;;  %v631_v29 = vmul.f32 %v1123_v22, %v1069_v62 }
 0x1bc   :  { %423 = vadd.xlane.f32.xlu1 %v422_v25  ;;  %v628_v34 = vmul.f32 %v1121_v19, %v1049_v45  ;;  %v629_v35 = vmul.f32 %v1123_v22, %v1053_v49 }
 0x1bd   :  { %v635_v33 = vadd.f32 %v631_v29, %v630_v28  ;;  %v1148_v36 = vadd.f32 %v1085_v21, %v682_v26  ;;  %v1151_v37 = vadd.f32 %v1085_v21, %v683_v27  ;;  %v643_v40 = vmax.f32 %v630_v28, %v631_v29 }
 0x1be   :  { %v632_v39 = vadd.f32 %v629_v35, %v628_v34  ;;  %v640_v42 = vmax.f32 %v628_v34, %v629_v35 }
 0x1bf   :  { %636 = vadd.xlane.f32.xlu0 %v635_v33 }
 0x1c0   :  { %426 = vadd.xlane.f32.xlu1 %v425_v32 }
 0x1c3   :  { %434 = vmax.xlane.f32.xlu0 %v433_v38 }
 0x1c4   :  { %633 = vadd.xlane.f32.xlu1 %v632_v39 }
 0x1c7   :  { %644 = vmax.xlane.f32.xlu0 %v643_v40 }
 0x1c8   :  { %431 = vmax.xlane.f32.xlu1 %v430_v41 }
 0x1cc   :  { %641 = vmax.xlane.f32.xlu1 %v640_v42  ;;  %v1166_v42 = vadd.s32 8, %v1079_v12 }
 0x1ce   :  { %vm483_vm3 = vcmp.lt.s32.totalorder %v1166_v42, 12 }
 0x1cf   :  { %v1170_v12 = vsel %vm483_vm3, 1.0, %v906_v20 }
 0x249   :  { %v424_v43 = vpop.xlane.xlu1 %423 }
 0x24a   :  { %v428_v55 = vmul.f32 0.00390625, %v424_v43 }
 0x24c   :  { %v637_v46 = vpop.xlane.xlu0 %636 }
 0x24d   :  { %v427_v47 = vpop.xlane.xlu1 %426  ;;  %v639_v53 = vmul.f32 0.00390625, %v637_v46 }
 0x24e   :  { %v429_v50 = vmul.f32 0.00390625, %v427_v47 }
 0x250   :  { %v435_v51 = vpop.xlane.xlu0 %434 }
 0x251   :  { %v437_v52 = vadd.f32 %v435_v51, %v429_v50  ;;  %v634_v21 = vpop.xlane.xlu1 %633 }
 0x252   :  { %v638_v5 = vmul.f32 0.00390625, %v634_v21 }
 0x253   :  { %v439_v54 = vmul.f32 0.5, %v437_v52 }
 0x254   :  { %v645_v56 = vpop.xlane.xlu0 %644 }
 0x255   :  { %vm442_vm11 = vcmp.ge.f32.partialorder %v420_v23, %v439_v54  ;;  %v647_v57 = vadd.f32 %v645_v56, %v639_v53  ;;  %v432_v60 = vpop.xlane.xlu1 %431  ;;  %vm443_vm12 = vcmp.ge.f32.partialorder %v421_v24, %v439_v54 }
 0x256   :  { %v436_v63 = vadd.f32 %v432_v60, %v428_v55  ;;  %v821_v1 = vsel %vm442_vm11, 1.0, %v906_v20  ;;  %v822_v3 = vsel %vm443_vm12, 1.0, %v906_v20  ;;  %vm553_vm12 = vcmp.ge.s32.totalorder %v1166_v42, 12 }
 0x257   :  { %v649_v0 = vmul.f32 0.5, %v647_v57  ;;  %v454_v6 = vmul.f32 0.0, %v821_v1  ;;  %v455_v13 = vmul.f32 0.0, %v822_v3 }
 0x258   :  { %v438_v2 = vmul.f32 0.5, %v436_v63 }
 0x259   :  { %v642_v4 = vpop.xlane.xlu1 %641  ;;  %vm652_vm13 = vcmp.ge.f32.partialorder %v630_v28, %v649_v0  ;;  %vm653_vm0 = vcmp.ge.f32.partialorder %v631_v29, %v649_v0 }
 0x25a   :  { %vm440_vm14 = vcmp.ge.f32.partialorder %v418_v17, %v438_v2  ;;  %vm441_vm15 = vcmp.ge.f32.partialorder %v419_v18, %v438_v2  ;;  %v646_v16 = vadd.f32 %v642_v4, %v638_v5  ;;  %v835_v23 = vsel %vm652_vm13, 1.0, %v906_v20 }
 0x25b   :  { %v819_v10 = vsel %vm440_vm14, 1.0, %v906_v20  ;;  %v820_v11 = vsel %vm441_vm15, 1.0, %v906_v20  ;;  %v836_v24 = vsel %vm653_vm0, 1.0, %v906_v20  ;;  %v664_v28 = vmul.f32 0.0, %v835_v23 }
 0x25c   :  { %v452_v14 = vmul.f32 %v819_v10, %v1107_v7  ;;  %v453_v15 = vmul.f32 %v820_v11, %v1107_v7  ;;  %v648_v17 = vmul.f32 0.5, %v646_v16  ;;  %v665_v29 = vmul.f32 0.0, %v836_v24 }
 0x25d   :  { %v475_v16 = vmul.f32 0.0, %v1111_v9  ;;  %v684_v9 = vmul.f32 0.0, %v1121_v19 }
 0x25e   :  { %v456_v25 = vadd.f32 %v454_v6, %v452_v14  ;;  %v463_v26 = vadd.f32 %v455_v13, %v453_v15  ;;  %vm650_vm1 = vcmp.ge.f32.partialorder %v628_v34, %v648_v17  ;;  %vm651_vm2 = vcmp.ge.f32.partialorder %v629_v35, %v648_v17 }
 0x25f   :  { %v833_v32 = vsel %vm650_vm1, 1.0, %v906_v20  ;;  %v834_v33 = vsel %vm651_vm2, 1.0, %v906_v20  ;;  %v474_v14 = vmul.f32 0.0, %v1109_v8 }
 0x260   :  { %v457_v18 = vrot.slane %v456_v25, 4  ;;  %v464_v27 = vrot.slane %v463_v26, 4  ;;  %v662_v40 = vmul.f32 %v833_v32, %v1107_v7  ;;  %v663_v41 = vmul.f32 %v834_v33, %v1107_v7 }
 0x262   :  { %v458_v38 = vadd.f32 %v457_v18, %v456_v25  ;;  %v465_v39 = vadd.f32 %v464_v27, %v463_v26  ;;  %v666_v47 = vadd.f32 %v664_v28, %v662_v40  ;;  %v673_v34 = vadd.f32 %v665_v29, %v663_v41 }
 0x263   :  { %v685_v28 = vmul.f32 0.0, %v1123_v22 }
 0x264   :  { %v459_v43 = vrot.slane %v458_v38, 2  ;;  %v466_v46 = vrot.slane %v465_v39, 2  ;;  %v667_v51 = vrot.slane %v666_v47, 4  ;;  %v674_v52 = vrot.slane %v673_v34, 4 }
 0x266   :  { %v460_v35 = vadd.f32 %v459_v43, %v458_v38  ;;  %v467_v50 = vadd.f32 %v466_v46, %v465_v39  ;;  %v668_v54 = vadd.f32 %v667_v51, %v666_v47  ;;  %v675_v55 = vadd.f32 %v674_v52, %v673_v34 }
 0x268   :  { %v461_v21 = vrot.slane %v460_v35, 1  ;;  %v468_v53 = vrot.slane %v467_v50, 1  ;;  %v669_v7 = vrot.slane %v668_v54, 2  ;;  %v676_v60 = vrot.slane %v675_v55, 2 }
 0x26a   :  { %v462_v56 = vadd.f32 %v461_v21, %v460_v35  ;;  %v469_v57 = vadd.f32 %v468_v53, %v467_v50  ;;  %v670_v63 = vadd.f32 %v669_v7, %v668_v54  ;;  %v677_v0 = vadd.f32 %v676_v60, %v675_v55 }
 0x26c   :  { %v1173_v1 = vmul.f32 %v462_v56, %v1061_v58  ;;  %v1176_v2 = vmul.f32 %v469_v57, %v1063_v59  ;;  %v1179_v3 = vmul.f32 %v462_v56, %v1047_v44  ;;  %v1182_v4 = vmul.f32 %v469_v57, %v1051_v48 }
 0x26d   :  { %v544_v5 = vmul.f32 0.0, %v462_v56  ;;  %v545_v6 = vmul.f32 0.0, %v469_v57  ;;  %v671_v10 = vrot.slane %v670_v63, 1  ;;  %v678_v11 = vrot.slane %v677_v0, 1 }
 0x26e   :  { %v497_v13 = vadd.f32 %v1176_v2, %v1173_v1  ;;  %v494_v15 = vadd.f32 %v1182_v4, %v1179_v3  ;;  %v546_v23 = vmul.f32 %v1170_v12, %v462_v56  ;;  %v547_v24 = vmul.f32 %v1170_v12, %v469_v57 }
 0x26f   :  { %v672_v25 = vadd.f32 %v671_v10, %v670_v63  ;;  %v679_v26 = vadd.f32 %v678_v11, %v677_v0  ;;  %v1193_v17 = vadd.f32 %v544_v5, %v1138_v30  ;;  %v1196_v18 = vadd.f32 %v545_v6, %v1141_v31 }
 0x270   :  { %498 = vadd.xlane.f32.xlu0 %v497_v13  ;;  %495 = vadd.xlane.f32.xlu1 %v494_v15  ;;  %v1198_v8 = vadd.f32 %v546_v23, %v474_v14  ;;  %v1200_v27 = vadd.f32 %v547_v24, %v475_v16  ;;  %v505_v34 = vmax.f32 %v1173_v1, %v1176_v2 }
 0x271   :  { %v1205_v29 = vmul.f32 %v672_v25, %v1067_v61  ;;  %v1208_v32 = vmul.f32 %v679_v26, %v1069_v62  ;;  %v1211_v30 = vmul.f32 %v672_v25, %v1049_v45  ;;  %v1214_v31 = vmul.f32 %v679_v26, %v1053_v49 }
 0x272   :  { %v744_v33 = vmul.f32 0.0, %v672_v25  ;;  %v745_v38 = vmul.f32 0.0, %v679_v26  ;;  %v746_v39 = vmul.f32 %v1170_v12, %v672_v25  ;;  %v747_v19 = vmul.f32 %v1170_v12, %v679_v26 }
 0x273   :  { %v697_v22 = vadd.f32 %v1208_v32, %v1205_v29  ;;  %v694_v40 = vadd.f32 %v1214_v31, %v1211_v30  ;;  %v502_v35 = vmax.f32 %v1179_v3, %v1182_v4 }
 0x274   :  { %v1223_v41 = vadd.f32 %v744_v33, %v1148_v36  ;;  %v1226_v43 = vadd.f32 %v745_v38, %v1151_v37  ;;  %v1228_v46 = vadd.f32 %v746_v39, %v684_v9  ;;  %v1230_v47 = vadd.f32 %v747_v19, %v685_v28 }
 0x275   :  { %698 = vadd.xlane.f32.xlu0 %v697_v22  ;;  %695 = vadd.xlane.f32.xlu1 %v694_v40  ;;  %v705_v36 = vmax.f32 %v1205_v29, %v1208_v32  ;;  %v702_v37 = vmax.f32 %v1211_v30, %v1214_v31 }
 0x279   :  { %506 = vmax.xlane.f32.xlu0 %v505_v34  ;;  %503 = vmax.xlane.f32.xlu1 %v502_v35 }
 0x27d   :  { %706 = vmax.xlane.f32.xlu0 %v705_v36  ;;  %703 = vmax.xlane.f32.xlu1 %v702_v37 }
 0x2fd   :  { %v499_v50 = vpop.xlane.xlu0 %498  ;;  %v496_v51 = vpop.xlane.xlu1 %495 }
 0x2fe   :  { %v501_v53 = vmul.f32 0.00390625, %v499_v50  ;;  %v500_v54 = vmul.f32 0.00390625, %v496_v51 }
 0x302   :  { %v699_v52 = vpop.xlane.xlu0 %698  ;;  %v696_v21 = vpop.xlane.xlu1 %695 }
 0x303   :  { %v701_v0 = vmul.f32 0.00390625, %v699_v52  ;;  %v700_v5 = vmul.f32 0.00390625, %v696_v21 }
 0x306   :  { %v507_v55 = vpop.xlane.xlu0 %506  ;;  %v504_v56 = vpop.xlane.xlu1 %503 }
 0x307   :  { %v509_v57 = vadd.f32 %v507_v55, %v501_v53  ;;  %v508_v7 = vadd.f32 %v504_v56, %v500_v54 }
 0x309   :  { %v511_v60 = vmul.f32 0.5, %v509_v57  ;;  %v510_v63 = vmul.f32 0.5, %v508_v7 }
 0x30a   :  { %v707_v6 = vpop.xlane.xlu0 %706  ;;  %v704_v10 = vpop.xlane.xlu1 %703 }
 0x30b   :  { %vm514_vm4 = vcmp.ge.f32.partialorder %v1173_v1, %v511_v60  ;;  %vm515_vm5 = vcmp.ge.f32.partialorder %v1176_v2, %v511_v60  ;;  %vm512_vm6 = vcmp.ge.f32.partialorder %v1179_v3, %v510_v63  ;;  %vm513_vm7 = vcmp.ge.f32.partialorder %v1182_v4, %v510_v63 }
 0x30c   :  { %v826_v11 = vsel %vm514_vm4, 1.0, %v906_v20  ;;  %v827_v13 = vsel %vm515_vm5, 1.0, %v906_v20  ;;  %v824_v14 = vsel %vm512_vm6, 1.0, %v906_v20  ;;  %v825_v15 = vsel %vm513_vm7, 1.0, %v906_v20 }
 0x30d   :  { %v526_v16 = vmul.f32 %v826_v11, %v1170_v12  ;;  %v527_v1 = vmul.f32 %v827_v13, %v1170_v12  ;;  %v524_v23 = vmul.f32 0.0, %v824_v14  ;;  %v525_v2 = vmul.f32 0.0, %v825_v15 }
 0x30e   :  { %v709_v24 = vadd.f32 %v707_v6, %v701_v0  ;;  %v708_v3 = vadd.f32 %v704_v10, %v700_v5 }
 0x30f   :  { %v528_v25 = vadd.f32 %v526_v16, %v524_v23  ;;  %v535_v4 = vadd.f32 %v527_v1, %v525_v2 }
 0x310   :  { %v711_v26 = vmul.f32 0.5, %v709_v24  ;;  %v710_v9 = vmul.f32 0.5, %v708_v3 }
 0x311   :  { %v529_v28 = vrot.slane %v528_v25, 4  ;;  %v536_v33 = vrot.slane %v535_v4, 4 }
 0x312   :  { %vm714_vm8 = vcmp.ge.f32.partialorder %v1205_v29, %v711_v26  ;;  %vm715_vm9 = vcmp.ge.f32.partialorder %v1208_v32, %v711_v26  ;;  %vm712_vm10 = vcmp.ge.f32.partialorder %v1211_v30, %v710_v9  ;;  %vm713_vm11 = vcmp.ge.f32.partialorder %v1214_v31, %v710_v9 }
 0x313   :  { %v530_v38 = vadd.f32 %v529_v28, %v528_v25  ;;  %v537_v39 = vadd.f32 %v536_v33, %v535_v4  ;;  %v839_v19 = vsel %vm714_vm8, 1.0, %v906_v20  ;;  %v840_v22 = vsel %vm715_vm9, 1.0, %v906_v20 }
 0x314   :  { %v726_v40 = vmul.f32 %v839_v19, %v1170_v12  ;;  %v727_v34 = vmul.f32 %v840_v22, %v1170_v12  ;;  %v837_v35 = vsel %vm712_vm10, 1.0, %v906_v20  ;;  %v838_v29 = vsel %vm713_vm11, 1.0, %v906_v20 }
 0x315   :  { %v531_v36 = vrot.slane %v530_v38, 2  ;;  %v538_v32 = vrot.slane %v537_v39, 2  ;;  %v724_v37 = vmul.f32 0.0, %v837_v35  ;;  %v725_v30 = vmul.f32 0.0, %v838_v29 }
 0x316   :  { %v828_v12 = vsel %vm553_vm12, 1.0, %v906_v20 }
 0x317   :  { %v532_v31 = vadd.f32 %v531_v36, %v530_v38  ;;  %v539_v50 = vadd.f32 %v538_v32, %v537_v39  ;;  %v728_v51 = vadd.f32 %v726_v40, %v724_v37  ;;  %v735_v52 = vadd.f32 %v727_v34, %v725_v30 }
 0x319   :  { %v533_v21 = vrot.slane %v532_v31, 1  ;;  %v540_v53 = vrot.slane %v539_v50, 1  ;;  %v729_v54 = vrot.slane %v728_v51, 4  ;;  %v736_v55 = vrot.slane %v735_v52, 4 }
 0x31b   :  { %v534_v56 = vadd.f32 %v533_v21, %v532_v31  ;;  %v541_v57 = vadd.f32 %v540_v53, %v539_v50  ;;  %v730_v7 = vadd.f32 %v729_v54, %v728_v51  ;;  %v737_v60 = vadd.f32 %v736_v55, %v735_v52 }
 0x31d   :  { %v562_v63 = vmul.f32 0.0, %v534_v56  ;;  %v563_v0 = vmul.f32 0.0, %v541_v57  ;;  %v564_v5 = vmul.f32 %v828_v12, %v534_v56  ;;  %v565_v6 = vmul.f32 %v828_v12, %v541_v57 }
 0x31e   :  { %v731_v10 = vrot.slane %v730_v7, 2  ;;  %v738_v42 = vrot.slane %v737_v60, 2 }
 0x31f   :  { %v566_v11 = vadd.f32 %v562_v63, %v1193_v17  ;;  %v567_v13 = vadd.f32 %v563_v0, %v1196_v18  ;;  %v568_v14 = vadd.f32 %v564_v5, %v1198_v8  ;;  %v569_v15 = vadd.f32 %v565_v6, %v1200_v27 }
 0x320   :  { %v732_v16 = vadd.f32 %v731_v10, %v730_v7  ;;  %v739_v20 = vadd.f32 %v738_v42, %v737_v60 }
 0x321   :  { %v570_v1 = vmul.f32 %v566_v11, %v1047_v44  ;;  %v571_v23 = vmul.f32 %v567_v13, %v1051_v48  ;;  %v572_v2 = vmul.f32 %v568_v14, %v1061_v58  ;;  %v573_v24 = vmul.f32 %v569_v15, %v1063_v59 }
 0x322   :  { %v733_v3 = vrot.slane %v732_v16, 1  ;;  %v740_v25 = vrot.slane %v739_v20, 1 }
 0x323   :  { %574 = vst [vmem:[%s1305_s3] sm:$0xff] %v570_v1  ;;  %575 = vst [vmem:[%s1305_s3 + $0x8] sm:$0xff] %v571_v23 }
 0x324   :  { %576 = vst [vmem:[%s1305_s3 + $0x10] sm:$0xff] %v572_v2  ;;  %577 = vst [vmem:[%s1305_s3 + $0x18] sm:$0xff] %v573_v24  ;;  %v734_v44 = vadd.f32 %v733_v3, %v732_v16  ;;  %v741_v48 = vadd.f32 %v740_v25, %v739_v20 }
 0x326   :  { %v752_v58 = vmul.f32 0.0, %v734_v44  ;;  %v753_v59 = vmul.f32 0.0, %v741_v48  ;;  %v754_v17 = vmul.f32 %v828_v12, %v734_v44  ;;  %v755_v18 = vmul.f32 %v828_v12, %v741_v48 }
 0x328   :  { %v756_v8 = vadd.f32 %v752_v58, %v1223_v41  ;;  %v757_v27 = vadd.f32 %v753_v59, %v1226_v43  ;;  %v758_v4 = vadd.f32 %v754_v17, %v1228_v46  ;;  %v759_v26 = vadd.f32 %v755_v18, %v1230_v47 }
 0x32a   :  { %v760_v9 = vmul.f32 %v756_v8, %v1049_v45  ;;  %v761_v28 = vmul.f32 %v757_v27, %v1053_v49  ;;  %v762_v33 = vmul.f32 %v758_v4, %v1067_v61  ;;  %v763_v38 = vmul.f32 %v759_v26, %v1069_v62 }
 0x32c   :  { %841 = vst [vmem:[%s1305_s3 + $0x20] sm:$0xff] %v760_v9  ;;  %842 = vst [vmem:[%s1305_s3 + $0x28] sm:$0xff] %v761_v28 }
 0x32d   :  { %843 = vst [vmem:[%s1305_s3 + $0x30] sm:$0xff] %v762_v33  ;;  %844 = vst [vmem:[%s1305_s3 + $0x38] sm:$0xff] %v763_v38 }

</bundles_post_ra>
